<compile_context>
chip_gen: v6e
topology: v6e:2x2x1
jax: 0.10.0
libtpu: 0.0.40
codegen_flags: <defaults>
</compile_context>

<pallas_src>
import jax
import jax.numpy as jnp
from jax import lax
from jax.experimental import pallas as pl
from jax.experimental.pallas import tpu as pltpu


def _critic_kernel(x_ref, w1_ref, b1_ref, w2_ref, b2_ref, w3_ref, b3_ref, o_ref):
    """One batch tile of the fused 3-layer MLP. All operands are VMEM/SMEM resident."""
    # Layer 1: single merged bf16 matmul (concat folded into x), f32 accumulation.
    h1 = jnp.dot(x_ref[...], w1_ref[...], preferred_element_type=jnp.float32)
    h1 = jnp.maximum(h1 + b1_ref[...], 0.0)

    # Layer 2: bf16 matmul with f32 accumulation; bias + ReLU in f32 on the VPU.
    h2 = jnp.dot(h1.astype(jnp.bfloat16), w2_ref[...],
                 preferred_element_type=jnp.float32)
    h2 = jnp.maximum(h2 + b2_ref[...], 0.0)

    # Output layer (out_features == 1): contract the hidden axis on the MXU and
    # emit a lane-dense (1, bb) row (no XLU cross-lane reduce, no masked column
    # store).  Kept in f32; the scalar bias is read from SMEM.
    o = lax.dot_general(w3_ref[...], h2, (((1,), (1,)), ((), ())),
                        preferred_element_type=jnp.float32)
    o_ref[...] = (o + b3_ref[0, 0]).astype(o_ref.dtype)


def _round_up(x, m):
    return ((x + m - 1) // m) * m


def critic_forward(obs_all, act_all, params, *, block_b=4096):
    """JAX wrapper: fold the concat, cast streamed operands to bf16, tile the batch."""
    w1, b1, w2, b2, w3, b3 = params
    B, obs_dim = obs_all.shape
    act_dim = act_all.shape[-1]
    in_dim = obs_dim + act_dim
    h1_dim = w1.shape[1]
    h2_dim = w2.shape[1]
    assert w1.shape[0] == in_dim

    # torch.cat folded into one streamed bf16 input (halves input DMA bytes);
    # matmuls accumulate in f32 via preferred_element_type.
    x = jnp.concatenate([obs_all.astype(jnp.bfloat16),
                         act_all.astype(jnp.bfloat16)], axis=-1)
    w1_bf = w1.astype(jnp.bfloat16)
    w2_bf = w2.astype(jnp.bfloat16)
    b1_f = b1.reshape(1, h1_dim).astype(jnp.float32)
    b2_f = b2.reshape(1, h2_dim).astype(jnp.float32)
    w3_row = w3.reshape(1, h2_dim).astype(jnp.float32)   # row layout for layer 3
    b3_s = b3.reshape(1, 1).astype(jnp.float32)          # scalar bias -> SMEM

    # Batch tile: full batch when small; otherwise a multiple of 256 capped at
    # block_b (the f32 h1/h2 intermediates ~ 2*bb*H*4 B are what bound bb, esp.
    # on v7x's 64 MiB VMEM), with >= 2 tiles so both v7x TensorCores get work.
    if B <= 256:
        bb = B
    else:
        bb = max(256, min(block_b, _round_up(-(-B // 2), 256)))
    grid = (pl.cdiv(B, bb),)

    def pinned(shape):
        # Weights/biases: same block every grid step -> DMA'd once, VMEM-resident.
        return pl.BlockSpec(shape, lambda i: (0,) * len(shape))

    out_row = pl.pallas_call(
        _critic_kernel,
        out_shape=jax.ShapeDtypeStruct((1, B), jnp.float32),
        grid=grid,
        in_specs=[
            pl.BlockSpec((bb, in_dim), lambda i: (i, 0)),        # streamed bf16 x
            pinned(w1_bf.shape),
            pinned(b1_f.shape),
            pinned(w2_bf.shape),
            pinned(b2_f.shape),
            pinned(w3_row.shape),
            pl.BlockSpec(memory_space=pltpu.MemorySpace.SMEM),   # b3 scalar
        ],
        out_specs=pl.BlockSpec((1, bb), lambda i: (0, i)),       # lane-dense rows
        compiler_params=pltpu.CompilerParams(
            dimension_semantics=("parallel",),
            vmem_limit_bytes=32 * 1024 * 1024,
        ),
    )(x, w1_bf, b1_f, w2_bf, b2_f, w3_row, b3_s)
    return out_row.reshape(B, 1)


def init_critic_params(key, total_obs_dim, total_act_dim, hidden_sizes=(256, 256)):
    """Deterministic init mirroring torch.nn.Linear defaults:
    U(-1/sqrt(fan_in), 1/sqrt(fan_in)) for both weights and biases.
    Weights are stored as (in_features, out_features) so x @ W == PyTorch's x @ W.T."""
    in_dim = total_obs_dim + total_act_dim
    dims = [in_dim, hidden_sizes[0], hidden_sizes[1], 1]
    params = []
    for i in range(3):
        fan_in, fan_out = dims[i], dims[i + 1]
        key, kw, kb = jax.random.split(key, 3)
        bound = 1.0 / jnp.sqrt(jnp.float32(fan_in))
        w = jax.random.uniform(kw, (fan_in, fan_out), jnp.float32, -bound, bound)
        b = jax.random.uniform(kb, (1, fan_out), jnp.float32, -bound, bound)
        params += [w, b]
    return tuple(params)


def critic_ref(obs_all, act_all, params):
    """Pure-JAX f32 reference for correctness checking."""
    w1, b1, w2, b2, w3, b3 = params
    x = jnp.concatenate([obs_all, act_all], axis=-1)
    h1 = jnp.maximum(x @ w1 + b1, 0.0)
    h2 = jnp.maximum(h1 @ w2 + b2, 0.0)
    return h2 @ w3 + b3


if __name__ == "__main__":
    key = jax.random.PRNGKey(0)
    k_obs, k_act, k_par, k_obs2, k_act2 = jax.random.split(key, 5)

    num_agents = 4
    obs_dim = 6           # per-agent obs dim  -> total_obs_dim = 24
    act_dim = 2           # per-agent act dim  -> total_act_dim = 8
    total_obs_dim = num_agents * obs_dim
    total_act_dim = num_agents * act_dim
    params = init_critic_params(k_par, total_obs_dim, total_act_dim,
                                hidden_sizes=(32, 32))

    # --- small batch: single-block path (bb == B) ---
    B = 8
    obs_all = jax.random.normal(k_obs, (B, total_obs_dim), jnp.float32)
    act_all = jax.random.normal(k_act, (B, total_act_dim), jnp.float32)
    out = jax.block_until_ready(critic_forward(obs_all, act_all, params))
    ref = critic_ref(obs_all, act_all, params)
    assert out.shape == (B, 1), out.shape
    # bf16 matmuls with f32 accumulation: loosen tolerance vs. the f32 reference.
    assert jnp.allclose(out, ref, atol=2e-2, rtol=2e-2), (out, ref)

    # --- larger batch: tiled grid (2 tiles incl. a partial one), pinned weights ---
    B2 = 300
    obs2 = jax.random.normal(k_obs2, (B2, total_obs_dim), jnp.float32)
    act2 = jax.random.normal(k_act2, (B2, total_act_dim), jnp.float32)
    out2 = jax.block_until_ready(critic_forward(obs2, act2, params))
    ref2 = critic_ref(obs2, act2, params)
    assert out2.shape == (B2, 1), out2.shape
    assert jnp.allclose(out2, ref2, atol=2e-2, rtol=2e-2), (out2, ref2)

    print("KERNEL_OK")
</pallas_src>

<mosaic_0001>
module attributes {stable_mosaic.version = 11 : i64} {
  func.func @_critic_kernel(%arg0: i32, %arg1: memref<8x32xbf16, #tpu.memory_space<vmem>>, %arg2: memref<32x32xbf16, #tpu.memory_space<vmem>>, %arg3: memref<1x32xf32, #tpu.memory_space<vmem>>, %arg4: memref<32x32xbf16, #tpu.memory_space<vmem>>, %arg5: memref<1x32xf32, #tpu.memory_space<vmem>>, %arg6: memref<1x32xf32, #tpu.memory_space<vmem>>, %arg7: memref<1x1xf32, #tpu.memory_space<smem>>, %arg8: memref<1x8xf32, #tpu.memory_space<vmem>>) attributes {dimension_semantics = [#tpu.dimension_semantics<parallel>], iteration_bounds = array<i64: 1>, scalar_prefetch = 0 : i64, scratch_operands = 0 : i64, tpu.core_type = #tpu.core_type<tc>, window_params = [{transform_indices = @transform_0, window_bounds = array<i64: 8, 32>}, {pipeline_mode = #tpu.pipeline_mode<synchronous>, transform_indices = @transform_1, window_bounds = array<i64: 32, 32>}, {pipeline_mode = #tpu.pipeline_mode<synchronous>, transform_indices = @transform_2, window_bounds = array<i64: 1, 32>}, {pipeline_mode = #tpu.pipeline_mode<synchronous>, transform_indices = @transform_3, window_bounds = array<i64: 32, 32>}, {pipeline_mode = #tpu.pipeline_mode<synchronous>, transform_indices = @transform_4, window_bounds = array<i64: 1, 32>}, {pipeline_mode = #tpu.pipeline_mode<synchronous>, transform_indices = @transform_5, window_bounds = array<i64: 1, 32>}, {transform_indices = @transform_6, window_bounds = array<i64: 1, 1>}, {transform_indices = @transform_7, window_bounds = array<i64: 1, 8>}]} {
    %c0 = arith.constant 0 : index
    %c0_0 = arith.constant 0 : index
    %0 = vector.load %arg1[%c0, %c0_0] : memref<8x32xbf16, #tpu.memory_space<vmem>>, vector<8x32xbf16>
    %c0_1 = arith.constant 0 : index
    %c0_2 = arith.constant 0 : index
    %1 = vector.load %arg2[%c0_1, %c0_2] : memref<32x32xbf16, #tpu.memory_space<vmem>>, vector<32x32xbf16>
    %cst = arith.constant dense<0.000000e+00> : vector<8x32xf32>
    %2 = tpu.matmul %0, %1, %cst {dimension_numbers = #tpu.dot_dimension_numbers<[1], [0], [0], [1], [0, 0, 1, 1], [], []>} : vector<8x32xbf16>, vector<32x32xbf16>, vector<8x32xf32> -> vector<8x32xf32>
    %c0_3 = arith.constant 0 : index
    %c0_4 = arith.constant 0 : index
    %3 = vector.load %arg3[%c0_3, %c0_4] : memref<1x32xf32, #tpu.memory_space<vmem>>, vector<1x32xf32>
    %4 = vector.broadcast %3 : vector<1x32xf32> to vector<8x32xf32>
    %5 = arith.addf %2, %4 : vector<8x32xf32>
    %cst_5 = arith.constant 0.000000e+00 : f32
    %6 = vector.broadcast %cst_5 : f32 to vector<8x32xf32>
    %7 = arith.maximumf %5, %6 : vector<8x32xf32>
    %8 = arith.truncf %7 : vector<8x32xf32> to vector<8x32xbf16>
    %c0_6 = arith.constant 0 : index
    %c0_7 = arith.constant 0 : index
    %9 = vector.load %arg4[%c0_6, %c0_7] : memref<32x32xbf16, #tpu.memory_space<vmem>>, vector<32x32xbf16>
    %cst_8 = arith.constant dense<0.000000e+00> : vector<8x32xf32>
    %10 = tpu.matmul %8, %9, %cst_8 {dimension_numbers = #tpu.dot_dimension_numbers<[1], [0], [0], [1], [0, 0, 1, 1], [], []>} : vector<8x32xbf16>, vector<32x32xbf16>, vector<8x32xf32> -> vector<8x32xf32>
    %c0_9 = arith.constant 0 : index
    %c0_10 = arith.constant 0 : index
    %11 = vector.load %arg5[%c0_9, %c0_10] : memref<1x32xf32, #tpu.memory_space<vmem>>, vector<1x32xf32>
    %12 = vector.broadcast %11 : vector<1x32xf32> to vector<8x32xf32>
    %13 = arith.addf %10, %12 : vector<8x32xf32>
    %cst_11 = arith.constant 0.000000e+00 : f32
    %14 = vector.broadcast %cst_11 : f32 to vector<8x32xf32>
    %15 = arith.maximumf %13, %14 : vector<8x32xf32>
    %c0_12 = arith.constant 0 : index
    %c0_13 = arith.constant 0 : index
    %16 = vector.load %arg6[%c0_12, %c0_13] : memref<1x32xf32, #tpu.memory_space<vmem>>, vector<1x32xf32>
    %cst_14 = arith.constant dense<0.000000e+00> : vector<1x8xf32>
    %17 = tpu.matmul %16, %15, %cst_14 {dimension_numbers = #tpu.dot_dimension_numbers<[1], [1], [0], [0], [0, 0, 1, 0], [], []>} : vector<1x32xf32>, vector<8x32xf32>, vector<1x8xf32> -> vector<1x8xf32>
    %c0_15 = arith.constant 0 : index
    %c0_16 = arith.constant 0 : index
    %18 = memref.load %arg7[%c0_15, %c0_16] : memref<1x1xf32, #tpu.memory_space<smem>>
    %19 = vector.broadcast %18 : f32 to vector<1x8xf32>
    %20 = arith.addf %17, %19 : vector<1x8xf32>
    %c0_17 = arith.constant 0 : index
    %c0_18 = arith.constant 0 : index
    %21 = vector.load %arg8[%c0_17, %c0_18] : memref<1x8xf32, #tpu.memory_space<vmem>>, vector<1x8xf32>
    tpu.vector_store %arg8[%c0_17, %c0_18], %20 {strides = array<i32>} : memref<1x8xf32, #tpu.memory_space<vmem>>, vector<1x8xf32>,
    return
  }
  func.func @transform_0(%arg0: i32) -> (i32, i32) {
    %c0_i32 = arith.constant 0 : i32
    %c0_i32_0 = arith.constant 0 : i32
    return %arg0, %c0_i32 : i32, i32
  }
  func.func @transform_1(%arg0: i32) -> (i32, i32) {
    %c0_i32 = arith.constant 0 : i32
    %c0_i32_0 = arith.constant 0 : i32
    %c0_i32_1 = arith.constant 0 : i32
    return %c0_i32, %c0_i32_0 : i32, i32
  }
  func.func @transform_2(%arg0: i32) -> (i32, i32) {
    %c0_i32 = arith.constant 0 : i32
    %c0_i32_0 = arith.constant 0 : i32
    %c0_i32_1 = arith.constant 0 : i32
    return %c0_i32, %c0_i32_0 : i32, i32
  }
  func.func @transform_3(%arg0: i32) -> (i32, i32) {
    %c0_i32 = arith.constant 0 : i32
    %c0_i32_0 = arith.constant 0 : i32
    %c0_i32_1 = arith.constant 0 : i32
    return %c0_i32, %c0_i32_0 : i32, i32
  }
  func.func @transform_4(%arg0: i32) -> (i32, i32) {
    %c0_i32 = arith.constant 0 : i32
    %c0_i32_0 = arith.constant 0 : i32
    %c0_i32_1 = arith.constant 0 : i32
    return %c0_i32, %c0_i32_0 : i32, i32
  }
  func.func @transform_5(%arg0: i32) -> (i32, i32) {
    %c0_i32 = arith.constant 0 : i32
    %c0_i32_0 = arith.constant 0 : i32
    %c0_i32_1 = arith.constant 0 : i32
    return %c0_i32, %c0_i32_0 : i32, i32
  }
  func.func @transform_6(%arg0: i32) -> (i32, i32) {
    %c0_i32 = arith.constant 0 : i32
    %c0_i32_0 = arith.constant 0 : i32
    %c0_i32_1 = arith.constant 0 : i32
    return %c0_i32, %c0_i32_0 : i32, i32
  }
  func.func @transform_7(%arg0: i32) -> (i32, i32) {
    %c0_i32 = arith.constant 0 : i32
    %c0_i32_0 = arith.constant 0 : i32
    return %c0_i32, %arg0 : i32, i32
  }
}

</mosaic_0001>

<bundles_post_ra>
// kernel: tpu_custom_call.1
= control target key start
LH: loop header
LB: loop body
LE: loop exit
PB: predicated region body
PF: predicated region fallthrough
CT: control target
= control target key end

     0   :  { %13 = vsyncpa [#allocation4], 0  ;;  %s515_s0 = inlined_call_operand.hbm [shape: bf16[8,32], index: 0, kind: input, shape index: {}]   ;;  %s516_s1 = inlined_call_operand.hbm [shape: bf16[32,32], index: 1, kind: input, shape index: {}]   ;;  %s517_s2 = inlined_call_operand.vmem [shape: f32[1,32], index: 2, kind: input, shape index: {}]   ;;  %s518_s3 = inlined_call_operand.hbm [shape: bf16[32,32], index: 3, kind: input, shape index: {}]   ;;  %s519_s4 = inlined_call_operand.vmem [shape: f32[1,32], index: 4, kind: input, shape index: {}]   ;;  %s520_s5 = inlined_call_operand.vmem [shape: f32[1,32], index: 5, kind: input, shape index: {}]   ;;  %s521_s6 = inlined_call_operand.<no memory space> [shape: f32[1,1], index: 6, kind: input, shape index: {}]   ;;  %s522_s7 = inlined_call_operand.hbm [shape: f32[1,8], index: 7, kind: output, shape index: {}]  }
   0x1   :  { %14 = vsyncpa [#allocation7], 0 }
   0x2   :  { %15 = vsyncpa [#allocation5], 0  ;;  %s439_s24 = smov [#allocation6]  }
   0x3   :  { %s31_s25 = sshll.u32 %s439_s24, 4  ;;  %s32_s25 = int_to_ptr.vmem [resolvable:$true] %s31_s25 }
   0x4   :  { %s361_s26 = scalar_lea.vmem %s32_s25, 256  ;;  %p366_p1 = scmp.lt.s32.totalorder %s32_s25, %s32_s25 }
   0x5   :  { %p362_p0 = scmp.ne.s32.totalorder %s32_s25, %s361_s26  ;;  %p367_p2 = scmp.lt.s32.totalorder %s361_s26, %s361_s26 }
   0x7   :  { %p368_p3 = por %p367_p2, %p366_p1 }
   0x9   :  { %p369_p4 = pnand %p368_p3, %p362_p0 }
   0xb   :  { %372 = shalt.err (!%p369_p4)
}
   0xc   :  { %s440_s27 = smov 64   ;;  %s441_s28 = smov 4  }
   0xd   :  { %37 = dma.hbm_to_vmem [thread:$0]  %s516_s1, 256, %s32_s25, [#allocation7], %s440_s27, %s440_s27, %s441_s28  }
   0xe   :  { %s442_s8 = smov [#allocation3]   ;;  %s443_s10 = smov [#allocation8]  }
   0xf   :  { %s22_s9 = sshll.u32 %s442_s8, 4  ;;  %s45_s11 = sshll.u32 %s443_s10, 4  ;;  %s23_s9 = int_to_ptr.vmem [resolvable:$true] %s22_s9  ;;  %s46_s11 = int_to_ptr.vmem [resolvable:$true] %s45_s11 }
  0x10   :  { %s381_s12 = scalar_lea.vmem %s23_s9, 64  ;;  %p386_p6 = scmp.lt.s32.totalorder %s23_s9, %s23_s9 }
  0x11   :  { %p382_p5 = scmp.ne.s32.totalorder %s23_s9, %s381_s12  ;;  %p387_p7 = scmp.lt.s32.totalorder %s381_s12, %s381_s12 }
  0x13   :  { %p388_p8 = por %p387_p7, %p386_p6 }
  0x15   :  { %p389_p9 = pnand %p388_p8, %p382_p5 }
  0x17   :  { %392 = shalt.err (!%p389_p9)
}
  0x18   :  { %25 = dma.hbm_to_vmem [thread:$0]  %s515_s0, 64, %s23_s9, [#allocation4]  }
  0x19   :  { %s401_s15 = scalar_lea.vmem %s46_s11, 256  ;;  %p406_p11 = scmp.lt.s32.totalorder %s46_s11, %s46_s11 }
  0x1a   :  { %p402_p10 = scmp.ne.s32.totalorder %s46_s11, %s401_s15  ;;  %p407_p12 = scmp.lt.s32.totalorder %s401_s15, %s401_s15 }
  0x1c   :  { %p408_p13 = por %p407_p12, %p406_p11 }
  0x1e   :  { %p409_p0 = pnand %p408_p13, %p402_p10 }
  0x20   :  { %412 = shalt.err (!%p409_p0)
}
  0x21   :  { %51 = dma.hbm_to_vmem [thread:$0]  %s518_s3, 256, %s46_s11, [#allocation7], %s440_s27, %s440_s27, %s441_s28  }
  0x22   :  { %433 = dma.done.wait [#allocation4], 64  }
  0x23   :  { %434 = vsyncadd [#allocation4], 4294967232 }
  0x24   :  { %435 = dma.done.wait [#allocation7], 512  }
  0x25   :  { %436 = vsyncadd [#allocation7], 4294966784  ;;  %v444_v0 = vmov 0.0   ;;  %vm445_vm0 = vmmov 0   ;;  %v349_v1 = vld [vmem:[#allocation6 + $0x8] sm:$0xff]   ;;  %v350_v2 = vld [vmem:[#allocation6] sm:$0xff]   ;;  %v207_v22 = vstv %s521_s6 }
  0x26   :  { %320 = vmatprep.subr.bf16.mxu0 %v444_v0  ;;  %324 = vmatprep.mubr.msk.bf16.mxu0 %vm445_vm0, %v444_v0  ;;  %v68_v3 = vld [vmem:[#allocation3] sm:$0xf]  ;;  %vm92_vm1 = vcmask 261120   ;;  %v352_v5 = vld [vmem:[#allocation8] sm:$0xff]   ;;  %s446_s22 = smov [#allocation9]   ;;  %vm284_vm2 = vcmask 57344  }
  0x27   :  { %328 = vmatprep.subr.bf16.mxu1 %v444_v0  ;;  %332 = vmatprep.mubr.msk.bf16.mxu1 %vm445_vm0, %v444_v0  ;;  %v351_v4 = vld [vmem:[#allocation8 + $0x8] sm:$0xff]  }
  0x28   :  { %321 = vmatpush3.bf16.msra.mxu0 %v349_v1  ;;  %329 = vmatpush3.bf16.msra.mxu1 %v351_v4  ;;  %v302_v6 = vld [vmem:[%s517_s2] ss:$0 sm:$0xff] }
  0x29   :  { %322 = vmatprep.subr.bf16.mxu0 %v444_v0  ;;  %330 = vmatprep.subr.bf16.mxu1 %v444_v0  ;;  %v306_v14 = vld [vmem:[%s519_s4] ss:$0 sm:$0xff]  ;;  %s292_s4 = sshll.u32 %s446_s22, 4  ;;  %s293_s4 = int_to_ptr.vmem [resolvable:$true] %s292_s4 }
  0x2a   :  { %v205_v20 = vld [vmem:[%s520_s5] sm:$0x1]  ;;  %s413_s23 = scalar_lea.vmem %s293_s4, 16  ;;  %s417_s24 = scalar_lea.vmem %s293_s4, 32 }
  0x2b   :  { %p414_p1 = scmp.ne.s32.totalorder %s293_s4, %s413_s23  ;;  %p418_p2 = scmp.lt.s32.totalorder %s293_s4, %s293_s4 }
  0x2c   :  { %323 = vmatpush3.bf16.msra.mxu0 %v350_v2  ;;  %331 = vmatpush3.bf16.msra.mxu1 %v352_v5  ;;  %p419_p3 = scmp.lt.s32.totalorder %s417_s24, %s413_s23 }
  0x2d   :  { %336 = vmatprep.subr.mxu0 %v444_v0 }
  0x2e   :  { %p420_p4 = por %p419_p3, %p418_p2 }
  0x2f   :  { %325 = vmatmul.mubr.msk.bf16.vlgmr.msra.gmra.mxu0 %vm92_vm1, %v68_v3 }
  0x30   :  { %338 = vmatprep.mubr.msk.f32.mxu0 %vm445_vm0, %v444_v0  ;;  %p421_p5 = pnand %p420_p4, %p414_p1 }
  0xef   :  { %v130_v7 = vpop.f32.mrf.mxu0 }
  0xf0   :  { %v131_v8 = vadd.f32 %v302_v6, %v130_v7 }
  0xf1   :  { %v326_v9 = vpop.f32.mrf.mxu0 }
  0xf2   :  { %v136_v10 = vmax.f32 %v131_v8, 0.0 }
  0xf3   :  { %v133_v11 = vpop.f32.mrf.mxu0 }
  0xf4   :  { %v137_v12 = vpack.c.bf16 %v136_v10, %v136_v10 }
  0xf5   :  { %v327_v13 = vpop.f32.mrf.mxu0 }
  0xf6   :  { %333 = vmatmul.mubr.msk.bf16.vlgmr.msra.gmra.mxu1 %vm92_vm1, %v137_v12 }
 0x1b6   :  { %v198_v15 = vpop.f32.mrf.mxu1 }
 0x1b7   :  { %v199_v16 = vadd.f32 %v306_v14, %v198_v15 }
 0x1b8   :  { %v334_v17 = vpop.f32.mrf.mxu1 }
 0x1b9   :  { %v204_v18 = vmax.f32 %v199_v16, 0.0 }
 0x1ba   :  { %v201_v19 = vpop.f32.mrf.mxu1 }
 0x1bb   :  { %337 = vmatpush3.xpose.msk.msra.mxu0 %vm92_vm1, %v204_v18 }
 0x1bc   :  { %v335_v21 = vpop.f32.mrf.mxu1 }
 0x1be   :  { %339 = vmatmul.mubr.msk.f32.vlgmr.msra.gmra.mxu0 %vm92_vm1, %v205_v20 }
 0x27e   :  { %v280_v23 = vpop.f32.mrf.mxu0 }
 0x27f   :  { %v281_v24 = vadd.f32 %v280_v23, %v207_v22 }
 0x280   :  { %v340_v25 = vpop.f32.mrf.mxu0 }
 0x281   :  { %285 = vst.msk [vmem:[#allocation9] sm:$0x1] %vm284_vm2, %v281_v24 }
 0x282   :  { %424 = shalt.err (!%p421_p5)
}
 0x283   :  { %295 = dma.vmem_to_hbm [thread:$0]  %s293_s4, 16, %s522_s7, [#allocation5]  }
 0x284   :  { %437 = dma.done.wait [#allocation5], 16  }
 0x285   :  { %438 = vsyncadd [#allocation5], 4294967280 }
 0x286   :  { %299 = vsyncpa [#allocation4], 1 }
 0x287   :  { %300 = vsyncpa [#allocation7], 1 }
 0x288   :  { %301 = vsyncpa [#allocation5], 1 }

</bundles_post_ra>
